<compile_context>
chip_gen: v7x
topology: tpu7x:2x2x1
jax: 0.10.0
libtpu: 0.0.40
codegen_flags: <defaults>
</compile_context>

<pallas_src>
import jax
import jax.numpy as jnp
from jax.experimental import pallas as pl
from jax.experimental.pallas import tpu as pltpu


# --------------------------------------------------------------------------
# Kernel 1: per-frequency complex channel mixing + band-stop mask
#   out[o, p] = sum_i (xr[i,p]*m[p]) * wr[i,o,p] - (xi[i,p]*m[p]) * wi[i,o,p]
#   (and the imaginary counterpart); weight varies per frequency bin p, so this
#   is a per-pixel MAC over C_in, not a matmul.
# --------------------------------------------------------------------------
def freq_mix_kernel(xr_ref, xi_ref, wr_ref, wi_ref, mask_ref, o_ref):
    # xr/xi: (1, C_in, HW)   wr/wi: (C_in, C_out, HW)   mask: (1, HW)
    # o:     (1, 2*C_out, HW)  rows [0:C_out]=real, [C_out:2*C_out]=imag
    m = mask_ref[...]                         # (1, HW)
    xr = xr_ref[0] * m                        # (C_in, HW)  mask on the small side
    xi = xi_ref[0] * m
    c_in = wr_ref.shape[0]
    c_out = wr_ref.shape[1]
    hw = xr.shape[-1]

    acc_r = jnp.zeros((c_out, hw), jnp.float32)
    acc_i = jnp.zeros((c_out, hw), jnp.float32)
    # Static unroll over C_in: only the two (C_out, HW) accumulators stay live.
    for i in range(c_in):
        xr_i = xr[i:i + 1, :]                 # (1, HW) -> sublane-broadcast
        xi_i = xi[i:i + 1, :]
        wr_i = wr_ref[i]                      # (C_out, HW)
        wi_i = wi_ref[i]
        acc_r = acc_r + xr_i * wr_i - xi_i * wi_i
        acc_i = acc_i + xr_i * wi_i + xi_i * wr_i

    o_ref[...] = jnp.concatenate([acc_r, acc_i], axis=0)[None]


def spectral_mix(xr, xi, w1r, w1i, mask):
    B, C_in, HW = xr.shape
    C_out = w1r.shape[1]
    packed = pl.pallas_call(
        freq_mix_kernel,
        out_shape=jax.ShapeDtypeStruct((B, 2 * C_out, HW), jnp.float32),
        grid=(B,),
        in_specs=[
            pl.BlockSpec((1, C_in, HW), lambda b: (b, 0, 0)),
            pl.BlockSpec((1, C_in, HW), lambda b: (b, 0, 0)),
            pl.BlockSpec((C_in, C_out, HW), lambda b: (0, 0, 0)),
            pl.BlockSpec((C_in, C_out, HW), lambda b: (0, 0, 0)),
            pl.BlockSpec((1, HW), lambda b: (0, 0)),
        ],
        out_specs=pl.BlockSpec((1, 2 * C_out, HW), lambda b: (b, 0, 0)),
        compiler_params=pltpu.CompilerParams(dimension_semantics=("parallel",)),
    )(xr, xi, w1r, w1i, mask)
    return packed[:, :C_out, :], packed[:, C_out:, :]


# --------------------------------------------------------------------------
# Kernel 2: 1x1 conv (w0, via MXU) + bias + rate1*spectral + rate2*conv
# --------------------------------------------------------------------------
def conv_combine_kernel(x_ref, f_ref, w0_ref, b0_ref, rate_ref, y_ref):
    x = x_ref[0]                              # (C_in, HW)
    f = f_ref[0]                              # (C_out, HW) spectral branch (real)
    w0 = w0_ref[...]                          # (C_out, C_in)
    b0 = b0_ref[...]                          # (C_out, 1)
    # 1x1 conv == channel matmul per pixel -> MXU
    out2 = jnp.dot(w0, x, preferred_element_type=jnp.float32) + b0
    r1 = rate_ref[0]
    r2 = rate_ref[1]
    y_ref[...] = (r1 * f + r2 * out2)[None]


def conv_combine(x, f_real, w0_w, w0_b, rates):
    B, C_in, HW = x.shape
    C_out = w0_w.shape[0]
    return pl.pallas_call(
        conv_combine_kernel,
        out_shape=jax.ShapeDtypeStruct((B, C_out, HW), jnp.float32),
        grid=(B,),
        in_specs=[
            pl.BlockSpec((1, C_in, HW), lambda b: (b, 0, 0)),
            pl.BlockSpec((1, C_out, HW), lambda b: (b, 0, 0)),
            pl.BlockSpec((C_out, C_in), lambda b: (0, 0)),
            pl.BlockSpec((C_out, 1), lambda b: (0, 0)),
            pl.BlockSpec(memory_space=pltpu.MemorySpace.SMEM),
        ],
        out_specs=pl.BlockSpec((1, C_out, HW), lambda b: (b, 0, 0)),
        compiler_params=pltpu.CompilerParams(dimension_semantics=("parallel",)),
    )(x, f_real, w0_w, w0_b.reshape(C_out, 1), rates)


# --------------------------------------------------------------------------
# Full forward (glue = FFT/IFFT + mask construction in plain JAX)
# --------------------------------------------------------------------------
def fam_forward(x, w1r, w1i, w0_w, w0_b, rate1, rate2, cuton=0.1):
    B, C_in, H, W = x.shape
    HW = H * W
    C_out = w1r.shape[1]
    # Lane-dense layout requires the flattened spatial extent to be a multiple
    # of 128 (pad in the wrapper for other spatial sizes); 16*16 = 256 is fine.
    assert HW % 128 == 0, "pad H*W to a multiple of 128 for other spatial sizes"

    # TODO(synk): torch.fft.fft2/ifft2 have no Pallas equivalent; computed with jnp.fft.
    x_ft = jnp.fft.fft2(x, norm="ortho")
    xr = jnp.real(x_ft).astype(jnp.float32).reshape(B, C_in, HW)
    xi = jnp.imag(x_ft).astype(jnp.float32).reshape(B, C_in, HW)

    # Effective band-stop mask in *unshifted* frequency coordinates.
    # PyTorch path: fftshift (roll by ceil(n/2)) -> zero center block ->
    # ifftshift (roll by n//2).  The channel-dim rolls cancel, and the net
    # spatial effect equals multiplying out_ft by ifftshift(mask_shifted).
    cy, cx = H // 2, W // 2
    rh, rw = int(cuton * cy), int(cuton * cx)
    row = jnp.arange(H)
    col = jnp.arange(W)
    row_zero = (row >= cy - rh) & (row < cy + rh)
    col_zero = (col >= cx - rw) & (col < cx + rw)
    mask_shifted = jnp.where(
        row_zero[:, None] & col_zero[None, :], 0.0, 1.0
    ).astype(jnp.float32)
    mask = jnp.roll(mask_shifted, shift=(-(H // 2), -(W // 2)), axis=(0, 1))
    mask_flat = mask.reshape(1, HW)

    w1r_f = w1r.reshape(C_in, C_out, HW)
    w1i_f = w1i.reshape(C_in, C_out, HW)

    out_r, out_i = spectral_mix(xr, xi, w1r_f, w1i_f, mask_flat)
    out_ft = (out_r + 1j * out_i).reshape(B, C_out, H, W)
    out = jnp.real(jnp.fft.ifft2(out_ft, s=(H, W), norm="ortho")).astype(jnp.float32)

    rates = jnp.stack([rate1, rate2]).astype(jnp.float32)
    y = conv_combine(x.reshape(B, C_in, HW), out.reshape(B, C_out, HW),
                     w0_w, w0_b, rates)
    return y.reshape(B, C_out, H, W)


# --------------------------------------------------------------------------
# Pure-JAX reference (mirrors the PyTorch code literally, incl. roll_n logic)
# --------------------------------------------------------------------------
def fam_reference(x, w1r, w1i, w0_w, w0_b, rate1, rate2, cuton):
    x_ft = jnp.fft.fft2(x, norm="ortho")
    w1 = w1r + 1j * w1i
    out_ft = jnp.einsum("bixy,ioxy->boxy", x_ft, w1)

    re, im = jnp.real(out_ft), jnp.imag(out_ft)
    # batch_fftshift2d: dims 1..3, shift = ceil(n/2)
    for d in (1, 2, 3):
        n = re.shape[d]
        s = n // 2 + (1 if n % 2 != 0 else 0)
        re = jnp.roll(re, -s, axis=d)
        im = jnp.roll(im, -s, axis=d)
    H, W = re.shape[2], re.shape[3]
    cy, cx = H // 2, W // 2
    rh, rw = int(cuton * cy), int(cuton * cx)
    re = re.at[:, :, cy - rh:cy + rh, cx - rw:cx + rw].set(0.0)
    im = im.at[:, :, cy - rh:cy + rh, cx - rw:cx + rw].set(0.0)
    # batch_ifftshift2d: dims 3..1, shift = n//2
    for d in (3, 2, 1):
        n = re.shape[d]
        re = jnp.roll(re, -(n // 2), axis=d)
        im = jnp.roll(im, -(n // 2), axis=d)
    out_ft2 = re + 1j * im
    out = jnp.real(jnp.fft.ifft2(out_ft2, s=(x.shape[-2], x.shape[-1]), norm="ortho"))
    out2 = jnp.einsum("oi,bihw->bohw", w0_w, x) + w0_b[None, :, None, None]
    return rate1 * out + rate2 * out2


if __name__ == "__main__":
    key = jax.random.PRNGKey(0)
    B, C_in, C_out, S = 2, 4, 8, 16  # spatial size S == `shapes` (weights1 is S x S)
    k1, k2, k3, k4, k5 = jax.random.split(key, 5)

    x = jax.random.normal(k1, (B, C_in, S, S), dtype=jnp.float32)

    # weights1 = scale * rand(C_in, C_out, S, S) complex  (real & imag ~ U[0,1))
    scale = 1.0 / (C_in * C_out)
    w1r = scale * jax.random.uniform(k2, (C_in, C_out, S, S), dtype=jnp.float32)
    w1i = scale * jax.random.uniform(k3, (C_in, C_out, S, S), dtype=jnp.float32)

    # w0: Conv2d(C_in, C_out, 1) -> weight (C_out, C_in), bias (C_out,)
    bound = 1.0 / (C_in ** 0.5)
    w0_w = jax.random.uniform(k4, (C_out, C_in), minval=-bound, maxval=bound,
                              dtype=jnp.float32)
    w0_b = jax.random.uniform(k5, (C_out,), minval=-bound, maxval=bound,
                              dtype=jnp.float32)

    rate1 = jnp.float32(0.5)  # init_rate_half
    rate2 = jnp.float32(0.5)

    cuton = 0.25  # emulates forward((x, 0.25)); the non-tuple default is 0.1

    y = fam_forward(x, w1r, w1i, w0_w, w0_b, rate1, rate2, cuton)
    y = jax.block_until_ready(y)

    y_ref = fam_reference(x, w1r, w1i, w0_w, w0_b, rate1, rate2, cuton)
    assert y.shape == (B, C_out, S, S), y.shape
    max_err = float(jnp.max(jnp.abs(y - y_ref)))
    assert jnp.allclose(y, y_ref, atol=1e-4, rtol=1e-4), max_err

    print("KERNEL_OK")
</pallas_src>

<mosaic_0001>
module attributes {stable_mosaic.version = 11 : i64} {
  func.func @freq_mix_kernel(%arg0: i32, %arg1: memref<1x4x256xf32, #tpu.memory_space<vmem>>, %arg2: memref<1x4x256xf32, #tpu.memory_space<vmem>>, %arg3: memref<4x8x256xf32, #tpu.memory_space<vmem>>, %arg4: memref<4x8x256xf32, #tpu.memory_space<vmem>>, %arg5: memref<1x256xf32, #tpu.memory_space<vmem>>, %arg6: memref<1x16x256xf32, #tpu.memory_space<vmem>>) attributes {dimension_semantics = [#tpu.dimension_semantics<parallel>], iteration_bounds = array<i64: 2>, scalar_prefetch = 0 : i64, scratch_operands = 0 : i64, tpu.core_type = #tpu.core_type<tc>, window_params = [{transform_indices = @transform_0, window_bounds = array<i64: 1, 4, 256>}, {transform_indices = @transform_1, window_bounds = array<i64: 1, 4, 256>}, {pipeline_mode = #tpu.pipeline_mode<synchronous>, transform_indices = @transform_2, window_bounds = array<i64: 4, 8, 256>}, {pipeline_mode = #tpu.pipeline_mode<synchronous>, transform_indices = @transform_3, window_bounds = array<i64: 4, 8, 256>}, {pipeline_mode = #tpu.pipeline_mode<synchronous>, transform_indices = @transform_4, window_bounds = array<i64: 1, 256>}, {transform_indices = @transform_5, window_bounds = array<i64: 1, 16, 256>}]} {
    %c0 = arith.constant 0 : index
    %c0_0 = arith.constant 0 : index
    %0 = vector.load %arg5[%c0, %c0_0] : memref<1x256xf32, #tpu.memory_space<vmem>>, vector<1x256xf32>
    %c0_1 = arith.constant 0 : index
    %c0_2 = arith.constant 0 : index
    %c0_3 = arith.constant 0 : index
    %1 = vector.load %arg1[%c0_1, %c0_2, %c0_3] : memref<1x4x256xf32, #tpu.memory_space<vmem>>, vector<1x4x256xf32>
    %2 = vector.shape_cast %1 : vector<1x4x256xf32> to vector<4x256xf32>
    %3 = vector.broadcast %0 : vector<1x256xf32> to vector<4x256xf32>
    %4 = arith.mulf %2, %3 : vector<4x256xf32>
    %c0_4 = arith.constant 0 : index
    %c0_5 = arith.constant 0 : index
    %c0_6 = arith.constant 0 : index
    %5 = vector.load %arg2[%c0_4, %c0_5, %c0_6] : memref<1x4x256xf32, #tpu.memory_space<vmem>>, vector<1x4x256xf32>
    %6 = vector.shape_cast %5 : vector<1x4x256xf32> to vector<4x256xf32>
    %7 = vector.broadcast %0 : vector<1x256xf32> to vector<4x256xf32>
    %8 = arith.mulf %6, %7 : vector<4x256xf32>
    %cst = arith.constant 0.000000e+00 : f32
    %9 = vector.broadcast %cst : f32 to vector<8x256xf32>
    %cst_7 = arith.constant 0.000000e+00 : f32
    %10 = vector.broadcast %cst_7 : f32 to vector<8x256xf32>
    %11 = vector.extract_strided_slice %4 {offsets = [0, 0], sizes = [1, 256], strides = [1, 1]} : vector<4x256xf32> to vector<1x256xf32>
    %12 = vector.extract_strided_slice %8 {offsets = [0, 0], sizes = [1, 256], strides = [1, 1]} : vector<4x256xf32> to vector<1x256xf32>
    %c0_8 = arith.constant 0 : index
    %c0_9 = arith.constant 0 : index
    %c0_10 = arith.constant 0 : index
    %13 = vector.load %arg3[%c0_8, %c0_9, %c0_10] : memref<4x8x256xf32, #tpu.memory_space<vmem>>, vector<1x8x256xf32>
    %14 = vector.shape_cast %13 : vector<1x8x256xf32> to vector<8x256xf32>
    %c0_11 = arith.constant 0 : index
    %c0_12 = arith.constant 0 : index
    %c0_13 = arith.constant 0 : index
    %15 = vector.load %arg4[%c0_11, %c0_12, %c0_13] : memref<4x8x256xf32, #tpu.memory_space<vmem>>, vector<1x8x256xf32>
    %16 = vector.shape_cast %15 : vector<1x8x256xf32> to vector<8x256xf32>
    %17 = vector.broadcast %11 : vector<1x256xf32> to vector<8x256xf32>
    %18 = arith.mulf %17, %14 : vector<8x256xf32>
    %19 = arith.addf %9, %18 : vector<8x256xf32>
    %20 = vector.broadcast %12 : vector<1x256xf32> to vector<8x256xf32>
    %21 = arith.mulf %20, %16 : vector<8x256xf32>
    %22 = arith.subf %19, %21 : vector<8x256xf32>
    %23 = vector.broadcast %11 : vector<1x256xf32> to vector<8x256xf32>
    %24 = arith.mulf %23, %16 : vector<8x256xf32>
    %25 = arith.addf %10, %24 : vector<8x256xf32>
    %26 = vector.broadcast %12 : vector<1x256xf32> to vector<8x256xf32>
    %27 = arith.mulf %26, %14 : vector<8x256xf32>
    %28 = arith.addf %25, %27 : vector<8x256xf32>
    %29 = vector.extract_strided_slice %4 {offsets = [1, 0], sizes = [1, 256], strides = [1, 1]} : vector<4x256xf32> to vector<1x256xf32>
    %30 = vector.extract_strided_slice %8 {offsets = [1, 0], sizes = [1, 256], strides = [1, 1]} : vector<4x256xf32> to vector<1x256xf32>
    %c1 = arith.constant 1 : index
    %c0_14 = arith.constant 0 : index
    %c0_15 = arith.constant 0 : index
    %31 = vector.load %arg3[%c1, %c0_14, %c0_15] : memref<4x8x256xf32, #tpu.memory_space<vmem>>, vector<1x8x256xf32>
    %32 = vector.shape_cast %31 : vector<1x8x256xf32> to vector<8x256xf32>
    %c1_16 = arith.constant 1 : index
    %c0_17 = arith.constant 0 : index
    %c0_18 = arith.constant 0 : index
    %33 = vector.load %arg4[%c1_16, %c0_17, %c0_18] : memref<4x8x256xf32, #tpu.memory_space<vmem>>, vector<1x8x256xf32>
    %34 = vector.shape_cast %33 : vector<1x8x256xf32> to vector<8x256xf32>
    %35 = vector.broadcast %29 : vector<1x256xf32> to vector<8x256xf32>
    %36 = arith.mulf %35, %32 : vector<8x256xf32>
    %37 = arith.addf %22, %36 : vector<8x256xf32>
    %38 = vector.broadcast %30 : vector<1x256xf32> to vector<8x256xf32>
    %39 = arith.mulf %38, %34 : vector<8x256xf32>
    %40 = arith.subf %37, %39 : vector<8x256xf32>
    %41 = vector.broadcast %29 : vector<1x256xf32> to vector<8x256xf32>
    %42 = arith.mulf %41, %34 : vector<8x256xf32>
    %43 = arith.addf %28, %42 : vector<8x256xf32>
    %44 = vector.broadcast %30 : vector<1x256xf32> to vector<8x256xf32>
    %45 = arith.mulf %44, %32 : vector<8x256xf32>
    %46 = arith.addf %43, %45 : vector<8x256xf32>
    %47 = vector.extract_strided_slice %4 {offsets = [2, 0], sizes = [1, 256], strides = [1, 1]} : vector<4x256xf32> to vector<1x256xf32>
    %48 = vector.extract_strided_slice %8 {offsets = [2, 0], sizes = [1, 256], strides = [1, 1]} : vector<4x256xf32> to vector<1x256xf32>
    %c2 = arith.constant 2 : index
    %c0_19 = arith.constant 0 : index
    %c0_20 = arith.constant 0 : index
    %49 = vector.load %arg3[%c2, %c0_19, %c0_20] : memref<4x8x256xf32, #tpu.memory_space<vmem>>, vector<1x8x256xf32>
    %50 = vector.shape_cast %49 : vector<1x8x256xf32> to vector<8x256xf32>
    %c2_21 = arith.constant 2 : index
    %c0_22 = arith.constant 0 : index
    %c0_23 = arith.constant 0 : index
    %51 = vector.load %arg4[%c2_21, %c0_22, %c0_23] : memref<4x8x256xf32, #tpu.memory_space<vmem>>, vector<1x8x256xf32>
    %52 = vector.shape_cast %51 : vector<1x8x256xf32> to vector<8x256xf32>
    %53 = vector.broadcast %47 : vector<1x256xf32> to vector<8x256xf32>
    %54 = arith.mulf %53, %50 : vector<8x256xf32>
    %55 = arith.addf %40, %54 : vector<8x256xf32>
    %56 = vector.broadcast %48 : vector<1x256xf32> to vector<8x256xf32>
    %57 = arith.mulf %56, %52 : vector<8x256xf32>
    %58 = arith.subf %55, %57 : vector<8x256xf32>
    %59 = vector.broadcast %47 : vector<1x256xf32> to vector<8x256xf32>
    %60 = arith.mulf %59, %52 : vector<8x256xf32>
    %61 = arith.addf %46, %60 : vector<8x256xf32>
    %62 = vector.broadcast %48 : vector<1x256xf32> to vector<8x256xf32>
    %63 = arith.mulf %62, %50 : vector<8x256xf32>
    %64 = arith.addf %61, %63 : vector<8x256xf32>
    %65 = vector.extract_strided_slice %4 {offsets = [3, 0], sizes = [1, 256], strides = [1, 1]} : vector<4x256xf32> to vector<1x256xf32>
    %66 = vector.extract_strided_slice %8 {offsets = [3, 0], sizes = [1, 256], strides = [1, 1]} : vector<4x256xf32> to vector<1x256xf32>
    %c3 = arith.constant 3 : index
    %c0_24 = arith.constant 0 : index
    %c0_25 = arith.constant 0 : index
    %67 = vector.load %arg3[%c3, %c0_24, %c0_25] : memref<4x8x256xf32, #tpu.memory_space<vmem>>, vector<1x8x256xf32>
    %68 = vector.shape_cast %67 : vector<1x8x256xf32> to vector<8x256xf32>
    %c3_26 = arith.constant 3 : index
    %c0_27 = arith.constant 0 : index
    %c0_28 = arith.constant 0 : index
    %69 = vector.load %arg4[%c3_26, %c0_27, %c0_28] : memref<4x8x256xf32, #tpu.memory_space<vmem>>, vector<1x8x256xf32>
    %70 = vector.shape_cast %69 : vector<1x8x256xf32> to vector<8x256xf32>
    %71 = vector.broadcast %65 : vector<1x256xf32> to vector<8x256xf32>
    %72 = arith.mulf %71, %68 : vector<8x256xf32>
    %73 = arith.addf %58, %72 : vector<8x256xf32>
    %74 = vector.broadcast %66 : vector<1x256xf32> to vector<8x256xf32>
    %75 = arith.mulf %74, %70 : vector<8x256xf32>
    %76 = arith.subf %73, %75 : vector<8x256xf32>
    %77 = vector.broadcast %65 : vector<1x256xf32> to vector<8x256xf32>
    %78 = arith.mulf %77, %70 : vector<8x256xf32>
    %79 = arith.addf %64, %78 : vector<8x256xf32>
    %80 = vector.broadcast %66 : vector<1x256xf32> to vector<8x256xf32>
    %81 = arith.mulf %80, %68 : vector<8x256xf32>
    %82 = arith.addf %79, %81 : vector<8x256xf32>
    %83 = tpu.concatenate %76, %82 in 0 : vector<8x256xf32>, vector<8x256xf32> -> vector<16x256xf32>
    %84 = vector.shape_cast %83 : vector<16x256xf32> to vector<1x16x256xf32>
    %c0_29 = arith.constant 0 : index
    %c0_30 = arith.constant 0 : index
    %c0_31 = arith.constant 0 : index
    %85 = vector.load %arg6[%c0_29, %c0_30, %c0_31] : memref<1x16x256xf32, #tpu.memory_space<vmem>>, vector<1x16x256xf32>
    tpu.vector_store %arg6[%c0_29, %c0_30, %c0_31], %84 {strides = array<i32>} : memref<1x16x256xf32, #tpu.memory_space<vmem>>, vector<1x16x256xf32>,
    return
  }
  func.func @transform_0(%arg0: i32) -> (i32, i32, i32) {
    %c0_i32 = arith.constant 0 : i32
    %c0_i32_0 = arith.constant 0 : i32
    %c0_i32_1 = arith.constant 0 : i32
    return %arg0, %c0_i32, %c0_i32_0 : i32, i32, i32
  }
  func.func @transform_1(%arg0: i32) -> (i32, i32, i32) {
    %c0_i32 = arith.constant 0 : i32
    %c0_i32_0 = arith.constant 0 : i32
    %c0_i32_1 = arith.constant 0 : i32
    return %arg0, %c0_i32, %c0_i32_0 : i32, i32, i32
  }
  func.func @transform_2(%arg0: i32) -> (i32, i32, i32) {
    %c0_i32 = arith.constant 0 : i32
    %c0_i32_0 = arith.constant 0 : i32
    %c0_i32_1 = arith.constant 0 : i32
    %c0_i32_2 = arith.constant 0 : i32
    return %c0_i32, %c0_i32_0, %c0_i32_1 : i32, i32, i32
  }
  func.func @transform_3(%arg0: i32) -> (i32, i32, i32) {
    %c0_i32 = arith.constant 0 : i32
    %c0_i32_0 = arith.constant 0 : i32
    %c0_i32_1 = arith.constant 0 : i32
    %c0_i32_2 = arith.constant 0 : i32
    return %c0_i32, %c0_i32_0, %c0_i32_1 : i32, i32, i32
  }
  func.func @transform_4(%arg0: i32) -> (i32, i32) {
    %c0_i32 = arith.constant 0 : i32
    %c0_i32_0 = arith.constant 0 : i32
    %c0_i32_1 = arith.constant 0 : i32
    return %c0_i32, %c0_i32_0 : i32, i32
  }
  func.func @transform_5(%arg0: i32) -> (i32, i32, i32) {
    %c0_i32 = arith.constant 0 : i32
    %c0_i32_0 = arith.constant 0 : i32
    %c0_i32_1 = arith.constant 0 : i32
    return %arg0, %c0_i32, %c0_i32_0 : i32, i32, i32
  }
}

</mosaic_0001>

<bundles_post_ra>
// kernel: tpu_custom_call.1
= control target key start
LH: loop header
LB: loop body
LE: loop exit
PB: predicated region body
PF: predicated region fallthrough
CT: control target
= control target key end

     0   :  { %s1346_s0 = inlined_call_operand.hbm [shape: f32[2,4,256], index: 0, kind: input, shape index: {}]   ;;  %s1347_s1 = inlined_call_operand.hbm [shape: f32[2,4,256], index: 1, kind: input, shape index: {}]   ;;  %s1348_s2 = inlined_call_operand.hbm [shape: f32[4,8,256], index: 2, kind: input, shape index: {}]   ;;  %s1349_s3 = inlined_call_operand.hbm [shape: f32[4,8,256], index: 3, kind: input, shape index: {}]   ;;  %s1350_s4 = inlined_call_operand.vmem [shape: f32[1,256], index: 4, kind: input, shape index: {}]   ;;  %s1351_s5 = inlined_call_operand.hbm [shape: f32[2,16,256], index: 5, kind: output, shape index: {}]  }
   0x1   :  { %1356 = sst [smem:[#allocation16_spill]] %s1348_s2 }
   0x2   :  { %1357 = sst [smem:[#allocation17_spill]] %s1349_s3 }
   0x3   :  { %10 = vsyncpa [#allocation3], 0 }
   0x4   :  { %12 = vsyncpa [#allocation3 + $0x1], 0 }
   0x5   :  { %13 = vsyncpa [#allocation6], 0 }
   0x6   :  { %15 = vsyncpa [#allocation6 + $0x1], 0 }
   0x7   :  { %16 = vsyncpa [#allocation9], 0 }
   0x8   :  { %17 = vsyncpa [#allocation4], 0 }
   0x9   :  { %19 = vsyncpa [#allocation4 + $0x1], 0  ;;  %s1025_s18 = smov 0   ;;  %s1027_s19 = smov 0  }
   0xa   :  { %s1029_s20 = smov 0   ;;  %s1031_s21 = smov 0  }
   0xb LB: > { %s1046_s22 = sadd.s32 4294967295, %s984_s21   ;;  %s689_s23 = sadd.s32 4294967294, %s984_s21   ;;  %s984_s21 = sphi %s1031_s21, %s1379_s21   ;;  %s980_s20 = sphi %s1029_s20, %s1378_s20   ;;  %s976_s19 = sphi %s1027_s19, %s1377_s19   ;;  %s972_s18 = sphi %s1025_s18, %s1376_s18  }
   0xc   : > { %p45_p0 = scmp.ne.s32.totalorder %s976_s19, %s972_s18  ;;  %p1352_p1 = scmp.eq.s32.totalorder %s1046_s22, 0 }
   0xd   : > { %p164_p3 = scmp.eq.s32.totalorder %s689_s23, 1  ;;  %p690_p5 = scmp.ge.s32.totalorder %s984_s21, 1 }
   0xe   : > { %p1055_p4 = por %p1352_p1, %p45_p0  ;;  %p171_p7 = scmp.lt.s32.totalorder %s984_s21, 3 }
   0xf   : > { %p1060_p6 = por %p164_p3, %p45_p0  ;;  %s986_s27 = smov [#allocation7]  }
  0x10   : > { %s1358_s24 = scalar_select %p1055_p4, 1, 0 }
  0x11   : > { %s1359_s25 = scalar_select %p1060_p6, 1, 0 }
  0x12   : > { %p1065_p8 = pnand %p690_p5, %p171_p7  ;;  %s183_s28 = sshll.u32 %s986_s27, 4  ;;  %s1069_s28 = int_to_ptr.vmem [resolvable:$true] %s183_s28 }
  0x13   : > { %s987_s30 = smov [#allocation8]   ;;  %s1362_s2 = sld [smem:[#allocation16_spill]] }
  0x14   : > { %s1360_s26 = scalar_select %p1065_p8, 1, 0 }
  0x15   : > { %p728_p9 = pneg %p1065_p8  ;;  %s196_s6 = sshll.u32 %s987_s30, 4  ;;  %s1080_s6 = int_to_ptr.vmem [resolvable:$true] %s196_s6 }
  0x17   : > { %p1076_p11 = pnand %p728_p9, %p1352_p1 }
  0x19   : > { %s790_s9 = scalar_lea.hbm %s1362_s2, 1024  ;;  %p792_p13 = pneg %p1076_p11 }
  0x1a   : > { %p791_p12 = scmp.ne.s32.totalorder %s1362_s2, %s790_s9  ;;  %p797_p5 = scmp.lt.u32.totalorder %s790_s9, %s1362_s2 }
  0x1c   : > { %p793_p0 = pnand %p792_p13, %p791_p12 }
  0x1e   : > { %p794_p3 = pneg %p793_p0 }
  0x20   : > { %p799_p7 = pnand %p797_p5, %p794_p3 }
  0x22   : > { %802 = shalt.err (!%p799_p7)
}
  0x23   : > { %s803_s14 = scalar_lea.vmem %s1069_s28, 1024  ;;  %p811_p2 = scmp.lt.s32.totalorder %s1069_s28, %s1069_s28 }
  0x24   : > { %p804_p9 = scmp.ne.s32.totalorder %s1069_s28, %s803_s14  ;;  %p812_p12 = scmp.lt.s32.totalorder %s803_s14, %s803_s14 }
  0x26   : > { %p806_p10 = pnand %p804_p9, %p792_p13  ;;  %p813_p0 = por %p812_p12, %p811_p2 }
  0x28   : > { %p807_p1 = pneg %p806_p10 }
  0x2a   : > { %p814_p6 = pnand %p813_p0, %p807_p1 }
  0x2c   : > { %817 = shalt.err (!%p814_p6)
}
  0x2d   : > { %s988_s15 = smov 256   ;;  %s989_s16 = smov 16  }
  0x2e   : > { %731 = dma.hbm_to_vmem [thread:$0]  (!%p1076_p11), %s1362_s2, 1024, %s1069_s28, [#allocation6], %s988_s15, %s988_s15, %s989_s16  }
  0x2f   : > { %s1363_s3 = sld [smem:[#allocation17_spill]] }
  0x35   : > { %s818_s7 = scalar_lea.hbm %s1363_s3, 1024 }
  0x36   : > { %p819_p2 = scmp.ne.s32.totalorder %s1363_s3, %s818_s7  ;;  %p825_p10 = scmp.lt.u32.totalorder %s818_s7, %s1363_s3 }
  0x38   : > { %p821_p1 = pnand %p819_p2, %p792_p13 }
  0x3a   : > { %p822_p6 = pneg %p821_p1 }
  0x3c   : > { %p827_p3 = pnand %p825_p10, %p822_p6 }
  0x3e   : > { %830 = shalt.err (!%p827_p3)
}
  0x3f   : > { %s831_s28 = scalar_lea.vmem %s1080_s6, 1024  ;;  %p839_p12 = scmp.lt.s32.totalorder %s1080_s6, %s1080_s6 }
  0x40   : > { %p832_p5 = scmp.ne.s32.totalorder %s1080_s6, %s831_s28  ;;  %p840_p0 = scmp.lt.s32.totalorder %s831_s28, %s831_s28 }
  0x42   : > { %p834_p7 = pnand %p832_p5, %p792_p13  ;;  %p841_p2 = por %p840_p0, %p839_p12 }
  0x44   : > { %p835_p9 = pneg %p834_p7 }
  0x46   : > { %p842_p1 = pnand %p841_p2, %p835_p9 }
  0x48   : > { %845 = shalt.err (!%p842_p1)
}
  0x49   : > { %734 = dma.hbm_to_vmem [thread:$0]  (!%p1076_p11), %s1363_s3, 1024, %s1080_s6, [#allocation9], %s988_s15, %s988_s15, %s989_s16  }
  0x4a   : > { %s1135_s14 = sadd.s32 1, %s984_s21   ;;  %s32_s29 = sadd.s32 1, %s980_s20 }
  0x4b   : > { %s29_s17 = ssub.s32 %s984_s21, %s1135_s14  ;;  %p39_p13 = scmp.ne.s32.totalorder %s980_s20, %s976_s19 }
  0x4c   : > { %p30_p6 = scmp.eq.s32.totalorder %s29_s17, 0  ;;  %p40_p10 = scmp.eq.s32.totalorder %s984_s21, 0 }
  0x4d   : > { %p1364_p3 = scmp.eq.s32.totalorder %s1046_s22, 1  ;;  %p748_p7 = scmp.lt.s32.totalorder %s984_s21, 2 }
  0x4e   : > { %s1151_s27 = scalar_select %p30_p6, %s980_s20, %s32_s29  }
  0x4f   : > { %p1145_p5 = por %p1364_p3, %p39_p13  ;;  %p41_p9 = por %p40_p10, %p39_p13 }
  0x50   : > { %s213_s30 = sand.u32 1, %s980_s20   ;;  %s711_s15 = sshll.u32 %s984_s21, 7 }
  0x51   : > { %s1365_s23 = scalar_select %p1145_p5, 1, 0 }
  0x52   : > { %s1154_s6 = sshll.u32 %s213_s30, 3  ;;  %s1160_s8 = scalar_lea.hbm %s1346_s0, %s711_s15 }
  0x53   : > { %s217_s9 = scalar_lea.vmem [#allocation2], %s1154_s6  ;;  %p1165_p11 = pnand %p748_p7, %p41_p9 }
  0x54   : > { %s225_s10 = sshll.u32 %s217_s9, 4  ;;  %s1172_s13 = scalar_lea.hbm %s1347_s1, %s711_s15  ;;  %s1163_s10 = int_to_ptr.vmem [resolvable:$true] %s225_s10 }
  0x55   : > { %s232_s29 = sand.u32 1, %s984_s21   ;;  %s214_s17 = scalar_lea.sflag [#allocation3], %s213_s30 }
  0x56   : > { %s846_s16 = scalar_lea.hbm %s1160_s8, 128  ;;  %p848_p0 = pneg %p1165_p11 }
  0x57   : > { %p847_p12 = scmp.ne.s32.totalorder %s1160_s8, %s846_s16  ;;  %s851_s2 = scalar_lea.hbm %s1346_s0, 256 }
  0x58   : > { %p852_p13 = scmp.lt.u32.totalorder %s1160_s8, %s1346_s0  ;;  %p853_p6 = scmp.lt.u32.totalorder %s851_s2, %s846_s16 }
  0x59   : > { %p849_p2 = pnand %p848_p0, %p847_p12  ;;  %p855_p3 = scmp.lt.u32.totalorder %s846_s16, %s1160_s8 }
  0x5a   : > { %p854_p10 = por %p853_p6, %p852_p13 }
  0x5b   : > { %p850_p1 = pneg %p849_p2 }
  0x5c   : > { %p856_p7 = por %p855_p3, %p854_p10 }
  0x5e   : > { %p857_p9 = pnand %p856_p7, %p850_p1 }
  0x60   : > { %860 = shalt.err (!%p857_p9)
}
  0x61   : > { %s861_s30 = scalar_lea.vmem %s1163_s10, 128  ;;  %s990_s15 = smov [#allocation2]  }
  0x62   : > { %p862_p12 = scmp.ne.s32.totalorder %s1163_s10, %s861_s30  ;;  %s866_s12 = sshll.u32 %s990_s15, 4  ;;  %s867_s12 = int_to_ptr.vmem [resolvable:$false] %s866_s12 }
  0x63   : > { %s868_s3 = scalar_lea.vmem %s867_s12, 256  ;;  %p869_p4 = scmp.lt.s32.totalorder %s1163_s10, %s867_s12 }
  0x64   : > { %p864_p2 = pnand %p862_p12, %p848_p0  ;;  %p870_p13 = scmp.lt.s32.totalorder %s868_s3, %s861_s30 }
  0x66   : > { %p865_p5 = pneg %p864_p2  ;;  %p871_p6 = por %p870_p13, %p869_p4 }
  0x68   : > { %p872_p10 = pnand %p871_p6, %p865_p5 }
  0x6a   : > { %875 = shalt.err (!%p872_p10)
}
  0x6b   : > { %738 = dma.hbm_to_vmem [thread:$0]  (!%p1165_p11), %s1160_s8, 128, %s1163_s10, %s214_s17  }
  0x6c   : > { %s236_s2 = scalar_lea.vmem [#allocation5], %s1154_s6  ;;  %s233_s7 = scalar_lea.sflag [#allocation6], %s232_s29 }
  0x6d   : > { %s244_s16 = sshll.u32 %s236_s2, 4  ;;  %s876_s9 = scalar_lea.hbm %s1172_s13, 128  ;;  %s245_s16 = int_to_ptr.vmem [resolvable:$true] %s244_s16 }
  0x6e   : > { %p877_p4 = scmp.ne.s32.totalorder %s1172_s13, %s876_s9  ;;  %s881_s15 = scalar_lea.hbm %s1347_s1, 256 }
  0x6f   : > { %p882_p3 = scmp.lt.u32.totalorder %s1172_s13, %s1347_s1  ;;  %p883_p7 = scmp.lt.u32.totalorder %s881_s15, %s876_s9 }
  0x70   : > { %p879_p5 = pnand %p877_p4, %p848_p0  ;;  %p885_p12 = scmp.lt.u32.totalorder %s876_s9, %s1172_s13 }
  0x71   : > { %p884_p9 = por %p883_p7, %p882_p3 }
  0x72   : > { %p880_p1 = pneg %p879_p5 }
  0x73   : > { %p886_p2 = por %p885_p12, %p884_p9 }
  0x75   : > { %p887_p13 = pnand %p886_p2, %p880_p1 }
  0x77   : > { %890 = shalt.err (!%p887_p13)
}
  0x78   : > { %s891_s6 = scalar_lea.vmem %s245_s16, 128  ;;  %s991_s8 = smov [#allocation5]  }
  0x79   : > { %p892_p6 = scmp.ne.s32.totalorder %s245_s16, %s891_s6  ;;  %s896_s10 = sshll.u32 %s991_s8, 4  ;;  %s897_s10 = int_to_ptr.vmem [resolvable:$false] %s896_s10 }
  0x7a   : > { %s898_s29 = scalar_lea.vmem %s897_s10, 256  ;;  %p899_p5 = scmp.lt.s32.totalorder %s245_s16, %s897_s10 }
  0x7b   : > { %p894_p10 = pnand %p892_p6, %p848_p0  ;;  %p900_p8 = scmp.lt.s32.totalorder %s898_s29, %s891_s6 }
  0x7d   : > { %p895_p4 = pneg %p894_p10  ;;  %p901_p3 = por %p900_p8, %p899_p5 }
  0x7f   : > { %p902_p7 = pnand %p901_p3, %p895_p4 }
  0x81   : > { %905 = shalt.err (!%p902_p7)
}
  0x82   : > { %741 = dma.hbm_to_vmem [thread:$0]  (!%p1165_p11), %s1172_s13, 128, %s245_s16, %s233_s7  }
  0x83   : > { %p1367_p1 = scmp.ne.s32.totalorder %s1360_s26, 0 }
  0x84   : > { %s1225_s17 = sand.u32 (!%p1367_p1), 1, %s976_s19   ;;  %p1368_p0 = scmp.ne.s32.totalorder (!%p1367_p1), %s1358_s24, 0 }
  0x85   : > { %253 = sbr.rel (%p1367_p1) target bundleno = 207 (0xcf), region = 40  ;;  %s701_s2 = sshll.u32 (!%p1367_p1), %s1225_s17, 3 }
  0x86   : > { %s256_s9 = scalar_lea.sflag (!%p1367_p1), [#allocation3], %s1225_s17  ;;  %s259_s28 = scalar_lea.vmem (!%p1367_p1), [#allocation2], %s701_s2 }
  0x8c   : > { %951 = dma.done.wait (%p1368_p0), %s256_s9, 128  }
  0x8d   : > { %953 = vsyncadd (%p1368_p0), %s256_s9, 4294967168  ;;  %s264_s11 = sand.u32 1, %s1046_s22   ;;  %s268_s26 = scalar_lea.vmem [#allocation5], %s701_s2 }
  0x8e   : > { %s265_s13 = scalar_lea.sflag [#allocation6], %s264_s11 }
  0x8f   : > { %955 = dma.done.wait (%p1368_p0), %s265_s13, 128  }
  0x90   : > { %957 = vsyncadd (%p1368_p0), %s265_s13, 4294967168  ;;  %p1369_p8 = scmp.eq.s32.totalorder %s1046_s22, 0 }
  0x92   : > { %959 = dma.done.wait (%p1369_p8), [#allocation6], 1024   ;;  %p1370_p11 = pmov %p1369_p8 }
  0x93   : > { %p1371_p9 = pmov %p1369_p8 }
  0x94   : > { %961 = vsyncadd (%p1370_p11), [#allocation6], 4294966272 }
  0x95   : > { %963 = dma.done.wait (%p1371_p9), [#allocation9], 1024   ;;  %p1372_p12 = pmov %p1369_p8 }
  0x96   : > { %v311_v0 = vlaneseq  ;;  %v308_v4 = vld [vmem:[%s1350_s4] sm:$0x3]  ;;  %v322_v8 = vld [vmem:[%s268_s26] sm:$0xff]  ;;  %v325_v48 = vld [vmem:[#allocation7 + $0x8] sm:$0xff]  ;;  %s705_s7 = sshll.u32 %s1225_s17, 5  ;;  %s713_s12 = sshll.u32 %s1046_s22, 9 }
  0x97   : > { %965 = vsyncadd (%p1372_p12), [#allocation9], 4294966272  ;;  %v309_v7 = vld [vmem:[%s259_s28] sm:$0xff]  ;;  %v1259_v22 = vld [vmem:[#allocation7 + $0x10] sm:$0xff]  ;;  %s307_s30 = scalar_lea.vmem [#allocation10], %s705_s7  ;;  %s1302_s8 = scalar_lea.hbm %s1351_s5, %s713_s12 }
  0x98   : > { %v1246_v1 = vshrl.u32 %v311_v0, 7  ;;  %v324_v20 = vld [vmem:[#allocation7] sm:$0xff]  ;;  %v386_v35 = vld [vmem:[#allocation8 + $0x10] sm:$0xff]  ;;  %v327_v49 = vld [vmem:[#allocation8 + $0x8] sm:$0xff]  ;;  %s574_s15 = sshll.u32 %s307_s30, 4  ;;  %s561_s10 = scalar_lea.sflag [#allocation4], %s1225_s17  ;;  %s1297_s15 = int_to_ptr.vmem [resolvable:$true] %s574_s15 }
  0x99   : > { %v326_v21 = vld [vmem:[#allocation8] sm:$0xff]  ;;  %v384_v50 = vld [vmem:[#allocation7 + $0x18] sm:$0xff]  ;;  %v1280_v56 = vld [vmem:[#allocation7 + $0x30] sm:$0xff]  ;;  %s906_s29 = scalar_lea.vmem %s1297_s15, 512  ;;  %p1373_p13 = scmp.ne.s32.totalorder %s1365_s23, 0 }
  0x9a   : > { %v313_v2 = vsub.s32 0, %v1246_v1  ;;  %v317_v3 = vsub.s32 1, %v1246_v1  ;;  %v448_v10 = vsub.s32 2, %v1246_v1  ;;  %v1255_v11 = vsub.s32 3, %v1246_v1  ;;  %v1267_v37 = vld [vmem:[#allocation7 + $0x20] sm:$0xff]  ;;  %p907_p2 = scmp.ne.s32.totalorder %s1297_s15, %s906_s29  ;;  %s992_s22 = smov [#allocation10]  }
  0x9b   : > { %v335_v14 = vsub.s32 4, %v1246_v1  ;;  %v394_v15 = vsub.s32 5, %v1246_v1  ;;  %v452_v32 = vsub.s32 6, %v1246_v1  ;;  %v510_v38 = vsub.s32 7, %v1246_v1  ;;  %v444_v55 = vld [vmem:[#allocation8 + $0x20] sm:$0xff]  ;;  %s910_s2 = sshll.u32 %s992_s22, 4  ;;  %s911_s2 = int_to_ptr.vmem [resolvable:$false] %s910_s2 }
  0x9c   : > { %v314_v5 = vrot.slane %v308_v4, %v313_v2  ;;  %v318_v6 = vrot.slane %v308_v4, %v317_v3  ;;  %p908_p6 = pnand %p907_p2, %p1373_p13  ;;  %s912_s9 = scalar_lea.vmem %s911_s2, 1024 }
  0x9d   : > { %p913_p4 = scmp.lt.s32.totalorder %s1297_s15, %s911_s2  ;;  %p914_p5 = scmp.lt.s32.totalorder %s912_s9, %s906_s29 }
  0x9e   : > { %v319_v9 = vcombine.low %v314_v5, %v318_v6  ;;  %v387_v5 = vld [vmem:[#allocation8 + $0x18] sm:$0xff]  ;;  %p909_p10 = pneg %p908_p6 }
  0x9f   : > { %p915_p3 = por %p914_p5, %p913_p4 }
  0xa0   : > { %v321_v12 = vmul.f32 %v319_v9, %v309_v7  ;;  %v323_v13 = vmul.f32 %v322_v8, %v319_v9  ;;  %v442_v9 = vld [vmem:[#allocation7 + $0x28] sm:$0xff] }
  0xa1   : > { %p916_p7 = pnand %p915_p3, %p909_p10 }
  0xa2   : > { %v332_v16 = vrot.slane %v321_v12, %v313_v2  ;;  %v355_v17 = vrot.slane %v323_v13, %v313_v2  ;;  %v391_v18 = vrot.slane %v321_v12, %v317_v3  ;;  %v413_v19 = vrot.slane %v323_v13, %v317_v3 }
  0xa3   : > { %v449_v23 = vrot.slane %v321_v12, %v448_v10  ;;  %v471_v24 = vrot.slane %v323_v13, %v448_v10  ;;  %v507_v25 = vrot.slane %v321_v12, %v1255_v11  ;;  %v529_v26 = vrot.slane %v323_v13, %v1255_v11 }
  0xa4   : > { %v342_v27 = vrot.slane %v332_v16, %v313_v2  ;;  %v365_v28 = vrot.slane %v355_v17, %v313_v2  ;;  %v401_v29 = vrot.slane %v391_v18, %v317_v3  ;;  %v423_v30 = vrot.slane %v413_v19, %v317_v3  ;;  %v502_v18 = vld [vmem:[#allocation8 + $0x30] sm:$0xff] }
  0xa5   : > { %v1263_v31 = vrot.slane %v449_v23, %v448_v10  ;;  %v1270_v40 = vrot.slane %v471_v24, %v448_v10  ;;  %v1273_v41 = vrot.slane %v507_v25, %v1255_v11  ;;  %v1276_v42 = vrot.slane %v529_v26, %v1255_v11  ;;  %v445_v26 = vld [vmem:[#allocation8 + $0x28] sm:$0xff] }
  0xa6   : > { %v347_v33 = vmul.f32 %v342_v27, %v324_v20  ;;  %v370_v34 = vmul.f32 %v365_v28, %v326_v21  ;;  %v406_v36 = vmul.f32 %v401_v29, %v1259_v22  ;;  %v428_v39 = vmul.f32 %v423_v30, %v386_v35 }
  0xa7   : > { %v336_v44 = vrot.slane %v321_v12, %v335_v14  ;;  %v359_v45 = vrot.slane %v323_v13, %v335_v14  ;;  %v395_v46 = vrot.slane %v321_v12, %v394_v15  ;;  %v464_v47 = vmul.f32 %v1263_v31, %v1267_v37 }
  0xa8   : > { %v372_v43 = vsub.f32 %v347_v33, %v370_v34  ;;  %v417_v51 = vrot.slane %v323_v13, %v394_v15  ;;  %v453_v52 = vrot.slane %v321_v12, %v452_v32  ;;  %v475_v53 = vrot.slane %v323_v13, %v452_v32  ;;  %v500_v33 = vld [vmem:[#allocation7 + $0x38] sm:$0xff] }
  0xa9   : > { %v346_v57 = vrot.slane %v336_v44, %v313_v2  ;;  %v369_v58 = vrot.slane %v359_v45, %v313_v2  ;;  %v405_v59 = vrot.slane %v395_v46, %v317_v3  ;;  %v486_v60 = vmul.f32 %v1270_v40, %v444_v55 }
  0xaa   : > { %v408_v54 = vadd.f32 %v406_v36, %v372_v43  ;;  %v427_v61 = vrot.slane %v417_v51, %v317_v3  ;;  %v463_v62 = vrot.slane %v453_v52, %v448_v10  ;;  %v511_v63 = vrot.slane %v321_v12, %v510_v38 }
  0xab   : > { %v348_v1 = vmul.f32 %v346_v57, %v325_v48  ;;  %v371_v4 = vmul.f32 %v369_v58, %v327_v49  ;;  %v407_v6 = vmul.f32 %v405_v59, %v384_v50  ;;  %v522_v7 = vmul.f32 %v1273_v41, %v1280_v56 }
  0xac   : > { %v430_v0 = vsub.f32 %v408_v54, %v428_v39  ;;  %v429_v8 = vmul.f32 %v427_v61, %v387_v5  ;;  %v485_v14 = vrot.slane %v475_v53, %v448_v10  ;;  %v533_v16 = vrot.slane %v323_v13, %v510_v38 }
  0xad   : > { %v373_v2 = vsub.f32 %v348_v1, %v371_v4  ;;  %v374_v17 = vmul.f32 %v342_v27, %v326_v21  ;;  %v521_v3 = vrot.slane %v511_v63, %v1255_v11  ;;  %v378_v12 = vmul.f32 %v365_v28, %v324_v20 }
  0xae   : > { %v466_v15 = vadd.f32 %v464_v47, %v430_v0  ;;  %v432_v19 = vmul.f32 %v401_v29, %v386_v35  ;;  %v544_v24 = vmul.f32 %v1276_v42, %v502_v18  ;;  %v465_v32 = vmul.f32 %v463_v62, %v442_v9  ;;  %v503_v47 = vld [vmem:[#allocation8 + $0x38] sm:$0xff] }
  0xaf   : > { %v409_v25 = vadd.f32 %v407_v6, %v373_v2  ;;  %v487_v34 = vmul.f32 %v485_v14, %v445_v26  ;;  %v380_v36 = vadd.f32 %v378_v12, %v374_v17  ;;  %v436_v10 = vmul.f32 %v423_v30, %v1259_v22 }
  0xb0   : > { %v488_v23 = vsub.f32 %v466_v15, %v486_v60  ;;  %v375_v39 = vmul.f32 %v346_v57, %v327_v49  ;;  %v543_v27 = vrot.slane %v533_v16, %v1255_v11  ;;  %v379_v38 = vmul.f32 %v369_v58, %v325_v48 }
  0xb1   : > { %v431_v21 = vsub.f32 %v409_v25, %v429_v8  ;;  %v523_v20 = vmul.f32 %v521_v3, %v500_v33  ;;  %v434_v28 = vadd.f32 %v432_v19, %v380_v36  ;;  %v490_v29 = vmul.f32 %v1263_v31, %v444_v55 }
  0xb2   : > { %v524_v13 = vadd.f32 %v522_v7, %v488_v23  ;;  %v433_v35 = vmul.f32 %v405_v59, %v387_v5  ;;  %v381_v45 = vadd.f32 %v379_v38, %v375_v39  ;;  %v437_v46 = vmul.f32 %v427_v61, %v384_v50 }
  0xb3   : > { %v467_v44 = vadd.f32 %v465_v32, %v431_v21  ;;  %v438_v51 = vadd.f32 %v436_v10, %v434_v28  ;;  %v494_v22 = vmul.f32 %v1270_v40, %v1267_v37  ;;  %v545_v49 = vmul.f32 %v543_v27, %v503_v47 }
  0xb4   : > { %v546_v43 = vsub.f32 %v524_v13, %v544_v24  ;;  %v435_v11 = vadd.f32 %v433_v35, %v381_v45  ;;  %v491_v48 = vmul.f32 %v463_v62, %v445_v26  ;;  %v548_v31 = vmul.f32 %v1273_v41, %v502_v18 }
  0xb5   : > { %v489_v30 = vsub.f32 %v467_v44, %v487_v34  ;;  %v492_v52 = vadd.f32 %v490_v29, %v438_v51  ;;  %v495_v55 = vmul.f32 %v485_v14, %v442_v9  ;;  %v552_v50 = vmul.f32 %v1276_v42, %v1280_v56 }
  0xb6   : > { %556 = vst [vmem:[%s307_s30] sm:$0xff] %v546_v43  ;;  %v439_v54 = vadd.f32 %v437_v46, %v435_v11  ;;  %v549_v40 = vmul.f32 %v521_v3, %v503_v47  ;;  %v553_v61 = vmul.f32 %v543_v27, %v500_v33 }
  0xb7   : > { %v525_v53 = vadd.f32 %v523_v20, %v489_v30  ;;  %v496_v57 = vadd.f32 %v494_v22, %v492_v52 }
  0xb8   : > { %v493_v37 = vadd.f32 %v491_v48, %v439_v54 }
  0xb9   : > { %v547_v58 = vsub.f32 %v525_v53, %v545_v49  ;;  %v550_v59 = vadd.f32 %v548_v31, %v496_v57 }
  0xba   : > { %v497_v60 = vadd.f32 %v495_v55, %v493_v37 }
  0xbb   : > { %557 = vst [vmem:[%s307_s30 + $0x8] sm:$0xff] %v547_v58  ;;  %v554_v62 = vadd.f32 %v552_v50, %v550_v59 }
  0xbc   : > { %v551_v41 = vadd.f32 %v549_v40, %v497_v60 }
  0xbd   : > { %558 = vst [vmem:[%s307_s30 + $0x10] sm:$0xff] %v554_v62 }
  0xbe   : > { %v555_v42 = vadd.f32 %v553_v61, %v551_v41 }
  0xc0   : > { %559 = vst [vmem:[%s307_s30 + $0x18] sm:$0xff] %v555_v42 }
  0xc1   : > { %919 = shalt.err (!%p916_p7)
}
  0xc2   : > { %s920_s28 = scalar_lea.hbm %s1302_s8, 512  ;;  %s924_s26 = scalar_lea.hbm %s1351_s5, 1024 }
  0xc3   : > { %p921_p1 = scmp.ne.s32.totalorder %s1302_s8, %s920_s28  ;;  %p925_p11 = scmp.lt.u32.totalorder %s1302_s8, %s1351_s5 }
  0xc4   : > { %p926_p9 = scmp.lt.u32.totalorder %s924_s26, %s920_s28  ;;  %p928_p2 = scmp.lt.u32.totalorder %s920_s28, %s1302_s8 }
  0xc5   : > { %p922_p0 = pnand %p921_p1, %p1373_p13 }
  0xc6   : > { %p927_p12 = por %p926_p9, %p925_p11 }
  0xc7   : > { %p923_p8 = pneg %p922_p0 }
  0xc8   : > { %p929_p6 = por %p928_p2, %p927_p12 }
  0xca   : > { %p930_p10 = pnand %p929_p6, %p923_p8 }
  0xcc   : > { %933 = shalt.err (!%p930_p10)
}
  0xcd   : > { %s993_s7 = smov 256   ;;  %s994_s30 = smov 16  }
  0xce   : > { %726 = dma.vmem_to_hbm [thread:$0]  (%p1373_p13), %s1297_s15, 512, %s1302_s8, %s561_s10, %s993_s7, %s993_s7, %s994_s30  }
  0xcf PF: > { %s589_s12 = sand.u32 1, %s972_s18   ;;  %p1374_p4 = scmp.ne.s32.totalorder %s1359_s25, 0 }
  0xd0   : > { %p1375_p5 = scmp.ge.s32.totalorder %s984_s21, 2  ;;  %s590_s3 = scalar_lea.sflag [#allocation4], %s589_s12 }
  0xd2   : > { %p743_p3 = pnand %p1375_p5, %p1374_p4 }
  0xd4   : > { %967 = dma.done.wait (!%p743_p3), %s590_s3, 512  }
  0xd5   : > { %969 = vsyncadd (!%p743_p3), %s590_s3, 4294966784  ;;  %p22_p7 = scmp.ge.s32.totalorder %s1135_s14, 4   ;;  %s1376_s18 = smov %s976_s19 }
  0xd6   : > { %s1377_s19 = smov %s980_s20  ;;  %s1378_s20 = smov %s1151_s27 }
  0xd7   : > { %s1379_s21 = smov %s1135_s14  ;;  %24 = sbr.rel (!%p22_p7) target bundleno = 11 (0xb), region = 112 }
  0xde   :  { %595 = vsyncpa [#allocation3], 1 }
  0xdf   :  { %597 = vsyncpa [#allocation3 + $0x1], 1 }
  0xe0   :  { %598 = vsyncpa [#allocation6], 1 }
  0xe1   :  { %600 = vsyncpa [#allocation6 + $0x1], 1 }
  0xe2   :  { %601 = vsyncpa [#allocation9], 1 }
  0xe3   :  { %602 = vsyncpa [#allocation4], 1 }
  0xe4   :  { %604 = vsyncpa [#allocation4 + $0x1], 1 }

</bundles_post_ra>
